<compile_context>
chip_gen: v7x
topology: tpu7x:2x2x1
jax: 0.10.0
libtpu: 0.0.40
codegen_flags: <defaults>
</compile_context>

<pallas_src>
import math

import jax
import jax.numpy as jnp
from jax.experimental import pallas as pl
from jax.experimental.pallas import tpu as pltpu


# ----------------------------------------------------------------------------
# Kernel
# ----------------------------------------------------------------------------
def _linear_kernel(x_ref, w_ref, b_ref, o_ref, acc_ref):
    """One (tm, tn) output tile; K is the reduction grid axis (axis 2)."""
    @pl.when(pl.program_id(2) == 0)
    def _init():
        acc_ref[...] = jnp.zeros_like(acc_ref)

    # bf16 MXU inputs, f32 accumulation.
    acc_ref[...] += jnp.dot(
        x_ref[...].astype(jnp.bfloat16),
        w_ref[...].astype(jnp.bfloat16),
        preferred_element_type=jnp.float32,
    )

    @pl.when(pl.program_id(2) == pl.num_programs(2) - 1)
    def _finalize():
        o_ref[...] = (acc_ref[...] + b_ref[...]).astype(o_ref.dtype)


# ----------------------------------------------------------------------------
# Wrapper
# ----------------------------------------------------------------------------
def _round_up(x, m):
    return (x + m - 1) // m * m


def linear_forward(x, weight, bias=None, *, tm=256, tn=256, tk=512):
    """y = x @ weight (+ bias), matching the PyTorch Linear forward.

    x: (..., n_in) float32; weight: (n_in, n_out); bias: (n_out,) or None.
    """
    n_in, n_out = weight.shape
    lead = x.shape[:-1]
    M = int(math.prod(lead)) if lead else 1
    K, N = n_in, n_out

    if bias is None:
        bias = jnp.zeros((n_out,), weight.dtype)

    # Adaptive tile sizes: never larger than the (aligned) problem dims.
    tm = min(tm, _round_up(M, 8))
    tn = min(tn, _round_up(N, 128))
    tk = min(tk, _round_up(K, 128))

    Mp, Np, Kp = _round_up(M, tm), _round_up(N, tn), _round_up(K, tk)

    x2 = x.reshape(M, K)
    if (Mp, Kp) != (M, K):
        x2 = jnp.pad(x2, ((0, Mp - M), (0, Kp - K)))
    w2 = weight
    if (Kp, Np) != (K, N):
        w2 = jnp.pad(w2, ((0, Kp - K), (0, Np - N)))
    b2 = bias.reshape(1, N)
    if Np != N:
        b2 = jnp.pad(b2, ((0, 0), (0, Np - N)))

    grid = (Mp // tm, Np // tn, Kp // tk)

    out = pl.pallas_call(
        _linear_kernel,
        out_shape=jax.ShapeDtypeStruct((Mp, Np), x.dtype),
        grid_spec=pltpu.PrefetchScalarGridSpec(
            num_scalar_prefetch=0,
            grid=grid,
            in_specs=[
                pl.BlockSpec((tm, tk), lambda i, j, k: (i, k)),
                pl.BlockSpec((tk, tn), lambda i, j, k: (k, j)),
                pl.BlockSpec((1, tn), lambda i, j, k: (0, j)),
            ],
            out_specs=pl.BlockSpec((tm, tn), lambda i, j, k: (i, j)),
            scratch_shapes=[pltpu.VMEM((tm, tn), jnp.float32)],
        ),
        compiler_params=pltpu.CompilerParams(
            dimension_semantics=("parallel", "parallel", "arbitrary"),
        ),
    )(x2, w2, b2)

    out = out[:M, :N]
    return out.reshape(*lead, n_out)


# ----------------------------------------------------------------------------
# Parameter init mirroring the PyTorch module:
#   weight = randn(n_in, n_out) / sqrt(n_in); bias = zeros(n_out)
# ----------------------------------------------------------------------------
def init_linear(key, n_in, n_out, has_bias=True):
    weight = jax.random.normal(key, (n_in, n_out), jnp.float32) / (n_in ** 0.5)
    bias = jnp.zeros((n_out,), jnp.float32) if has_bias else None
    return weight, bias


# ----------------------------------------------------------------------------
if __name__ == "__main__":
    B, T, n_in, n_out = 2, 8, 256, 512

    key = jax.random.PRNGKey(0)
    kx, kw = jax.random.split(key)
    weight, bias = init_linear(kw, n_in, n_out, has_bias=True)
    x = jax.random.normal(kx, (B, T, n_in), jnp.float32)

    # tk=128 exercises the K-reduction grid axis (2 steps) with the
    # pl.when init/finalize accumulator path; tn=256 gives 2 N tiles.
    out = linear_forward(x, weight, bias, tm=256, tn=256, tk=128)
    out = jax.block_until_ready(out)

    assert out.shape == (B, T, n_out), out.shape

    ref = x @ weight + bias  # pure-JAX f32 reference (matches torch forward)
    err = float(jnp.max(jnp.abs(out - ref)))
    assert jnp.allclose(out, ref, atol=2e-2, rtol=2e-2), f"max abs err {err}"

    print("KERNEL_OK")
</pallas_src>

<mosaic_0001>
module attributes {stable_mosaic.version = 11 : i64} {
  func.func @_linear_kernel(%arg0: i32, %arg1: i32, %arg2: i32, %arg3: memref<16x128xf32, #tpu.memory_space<vmem>>, %arg4: memref<128x256xf32, #tpu.memory_space<vmem>>, %arg5: memref<1x256xf32, #tpu.memory_space<vmem>>, %arg6: memref<16x256xf32, #tpu.memory_space<vmem>>, %arg7: memref<16x256xf32, #tpu.memory_space<vmem>>) attributes {dimension_semantics = [#tpu.dimension_semantics<parallel>, #tpu.dimension_semantics<parallel>, #tpu.dimension_semantics<arbitrary>], iteration_bounds = array<i64: 1, 2, 2>, scalar_prefetch = 0 : i64, scratch_operands = 1 : i64, tpu.core_type = #tpu.core_type<tc>, window_params = [{transform_indices = @transform_0, window_bounds = array<i64: 16, 128>}, {transform_indices = @transform_1, window_bounds = array<i64: 128, 256>}, {transform_indices = @transform_2, window_bounds = array<i64: 1, 256>}, {transform_indices = @transform_3, window_bounds = array<i64: 16, 256>}]} {
    %c0_i32 = arith.constant 0 : i32
    %0 = arith.cmpi eq, %arg2, %c0_i32 : i32
    %1 = arith.extui %0 : i1 to i32
    %c0_i32_0 = arith.constant 0 : i32
    %2 = arith.cmpi ne, %1, %c0_i32_0 : i32
    scf.if %2 {
      %cst_9 = arith.constant 0.000000e+00 : f32
      %14 = vector.broadcast %cst_9 : f32 to vector<16x256xf32>
      %c0_10 = arith.constant 0 : index
      %c0_11 = arith.constant 0 : index
      %15 = vector.load %arg7[%c0_10, %c0_11] : memref<16x256xf32, #tpu.memory_space<vmem>>, vector<16x256xf32>
      tpu.vector_store %arg7[%c0_10, %c0_11], %14 {strides = array<i32>} : memref<16x256xf32, #tpu.memory_space<vmem>>, vector<16x256xf32>,
    } else {
    }
    %c0 = arith.constant 0 : index
    %c0_1 = arith.constant 0 : index
    %3 = vector.load %arg7[%c0, %c0_1] : memref<16x256xf32, #tpu.memory_space<vmem>>, vector<16x256xf32>
    %c0_2 = arith.constant 0 : index
    %c0_3 = arith.constant 0 : index
    %4 = vector.load %arg3[%c0_2, %c0_3] : memref<16x128xf32, #tpu.memory_space<vmem>>, vector<16x128xf32>
    %5 = arith.truncf %4 : vector<16x128xf32> to vector<16x128xbf16>
    %c0_4 = arith.constant 0 : index
    %c0_5 = arith.constant 0 : index
    %6 = vector.load %arg4[%c0_4, %c0_5] : memref<128x256xf32, #tpu.memory_space<vmem>>, vector<128x256xf32>
    %7 = arith.truncf %6 : vector<128x256xf32> to vector<128x256xbf16>
    %cst = arith.constant dense<0.000000e+00> : vector<16x256xf32>
    %8 = tpu.matmul %5, %7, %cst {dimension_numbers = #tpu.dot_dimension_numbers<[1], [0], [0], [1], [0, 0, 1, 1], [], []>} : vector<16x128xbf16>, vector<128x256xbf16>, vector<16x256xf32> -> vector<16x256xf32>
    %9 = arith.addf %3, %8 : vector<16x256xf32>
    %c0_6 = arith.constant 0 : index
    %c0_7 = arith.constant 0 : index
    %10 = vector.load %arg7[%c0_6, %c0_7] : memref<16x256xf32, #tpu.memory_space<vmem>>, vector<16x256xf32>
    tpu.vector_store %arg7[%c0_6, %c0_7], %9 {strides = array<i32>} : memref<16x256xf32, #tpu.memory_space<vmem>>, vector<16x256xf32>,
    %c1_i32 = arith.constant 1 : i32
    %11 = arith.cmpi eq, %arg2, %c1_i32 : i32
    %12 = arith.extui %11 : i1 to i32
    %c0_i32_8 = arith.constant 0 : i32
    %13 = arith.cmpi ne, %12, %c0_i32_8 : i32
    scf.if %13 {
      %c0_9 = arith.constant 0 : index
      %c0_10 = arith.constant 0 : index
      %14 = vector.load %arg7[%c0_9, %c0_10] : memref<16x256xf32, #tpu.memory_space<vmem>>, vector<16x256xf32>
      %c0_11 = arith.constant 0 : index
      %c0_12 = arith.constant 0 : index
      %15 = vector.load %arg5[%c0_11, %c0_12] : memref<1x256xf32, #tpu.memory_space<vmem>>, vector<1x256xf32>
      %16 = vector.broadcast %15 : vector<1x256xf32> to vector<16x256xf32>
      %17 = arith.addf %14, %16 : vector<16x256xf32>
      %c0_13 = arith.constant 0 : index
      %c0_14 = arith.constant 0 : index
      %18 = vector.load %arg6[%c0_13, %c0_14] : memref<16x256xf32, #tpu.memory_space<vmem>>, vector<16x256xf32>
      tpu.vector_store %arg6[%c0_13, %c0_14], %17 {strides = array<i32>} : memref<16x256xf32, #tpu.memory_space<vmem>>, vector<16x256xf32>,
    } else {
    }
    return
  }
  func.func @transform_0(%arg0: i32, %arg1: i32, %arg2: i32) -> (i32, i32) {
    %c0_i32 = arith.constant 0 : i32
    return %arg0, %arg2 : i32, i32
  }
  func.func @transform_1(%arg0: i32, %arg1: i32, %arg2: i32) -> (i32, i32) {
    %c0_i32 = arith.constant 0 : i32
    return %arg2, %arg1 : i32, i32
  }
  func.func @transform_2(%arg0: i32, %arg1: i32, %arg2: i32) -> (i32, i32) {
    %c0_i32 = arith.constant 0 : i32
    %c0_i32_0 = arith.constant 0 : i32
    return %c0_i32, %arg1 : i32, i32
  }
  func.func @transform_3(%arg0: i32, %arg1: i32, %arg2: i32) -> (i32, i32) {
    %c0_i32 = arith.constant 0 : i32
    return %arg0, %arg1 : i32, i32
  }
}

</mosaic_0001>

<bundles_post_ra>
// kernel: tpu_custom_call.1
= control target key start
LH: loop header
LB: loop body
LE: loop exit
PB: predicated region body
PF: predicated region fallthrough
CT: control target
= control target key end

     0   :  { %s1403_s0 = inlined_call_operand.hbm [shape: f32[16,256], index: 0, kind: input, shape index: {}]   ;;  %s1404_s1 = inlined_call_operand.hbm [shape: f32[256,512], index: 1, kind: input, shape index: {}]   ;;  %s1405_s2 = inlined_call_operand.vmem [shape: f32[1,512], index: 2, kind: input, shape index: {}]   ;;  %s1406_s3 = inlined_call_operand.hbm [shape: f32[16,512], index: 3, kind: output, shape index: {}]  }
   0x1   :  { %1418 = sst [smem:[#allocation18_spill]] %s1403_s0 }
   0x2   :  { %1419 = sst [smem:[#allocation19_spill]] %s1406_s3 }
   0x3   :  { %8 = vsyncpa [#allocation4], 0 }
   0x4   :  { %10 = vsyncpa [#allocation4 + $0x1], 0 }
   0x5   :  { %11 = vsyncpa [#allocation7], 0 }
   0x6   :  { %13 = vsyncpa [#allocation7 + $0x1], 0 }
   0x7   :  { %14 = vsyncpa [#allocation5], 0 }
   0x8   :  { %16 = vsyncpa [#allocation5 + $0x1], 0  ;;  %s981_s12 = smov 0   ;;  %s983_s13 = smov 0  }
   0x9   :  { %s985_s14 = smov 0   ;;  %s987_s15 = smov 0  }
   0xa   :  { %s989_s16 = smov 0   ;;  %s991_s17 = smov 0  }
   0xb   :  { %s993_s18 = smov 0   ;;  %s995_s19 = smov 0  }
   0xc   :  { %s997_s20 = smov 0   ;;  %s999_s21 = smov 0  }
   0xd   :  { %s1001_s22 = smov 0   ;;  %s1003_s23 = smov 0  }
   0xe   :  { %s1005_s24 = smov 0   ;;  %s1007_s25 = smov 0  }
   0xf LB: > { %1420 = sst [smem:[#allocation12_spill]] %s926_s20  ;;  %s570_s26 = sadd.s32 4294967295, %s946_s25   ;;  %s946_s25 = sphi %s1007_s25, %s22_s25   ;;  %s942_s24 = sphi %s1005_s24, %s1471_s24   ;;  %s938_s23 = sphi %s1003_s23, %s1470_s23   ;;  %s934_s22 = sphi %s1001_s22, %s1469_s22   ;;  %s930_s21 = sphi %s999_s21, %s1468_s21   ;;  %s926_s20 = sphi %s997_s20, %s1467_s20   ;;  %s922_s19 = sphi %s995_s19, %s1466_s19   ;;  %s918_s18 = sphi %s993_s18, %s1465_s18   ;;  %s914_s17 = sphi %s991_s17, %s1464_s17   ;;  %s910_s16 = sphi %s989_s16, %s1463_s16   ;;  %s906_s15 = sphi %s987_s15, %s1462_s15   ;;  %s902_s14 = sphi %s985_s14, %s1461_s14   ;;  %s898_s13 = sphi %s983_s13, %s1460_s13   ;;  %s894_s12 = sphi %s981_s12, %s1459_s12  }
  0x10   : > { %1421 = sst [smem:[#allocation13_spill]] %s930_s21  ;;  %s34_s27 = sadd.s32 1, %s938_s23 }
  0x11   : > { %p1051_p0 = scmp.ge.s32.totalorder %s34_s27, 2  ;;  %s50_s29 = sadd.s32 1, %s926_s20 }
  0x12   : > { %p57_p1 = scmp.ne.s32.totalorder %s926_s20, %s922_s19  ;;  %p1410_p2 = scmp.eq.s32.totalorder %s946_s25, 0 }
  0x13   : > { %s1473_s27 = smov (%p1051_p0, %s34_s27), 0  ;;  %p63_p4 = scmp.ne.s32.totalorder %s922_s19, %s918_s18 }
  0x14   : > { %1423 = sst [smem:[#allocation14_spill]] %s1473_s27  ;;  %p1065_p3 = por %p1410_p2, %p57_p1 }
  0x15   : > { %s1072_s4 = ssub.s32 %s938_s23, %s1473_s27  ;;  %p1074_p5 = scmp.eq.s32.totalorder %s570_s26, 0 }
  0x16   : > { %p48_p6 = scmp.eq.s32.totalorder %s1072_s4, 0  ;;  %p1079_p7 = scmp.eq.s32.totalorder %s570_s26, 3 }
  0x17   : > { %s1425_s5 = scalar_select %p1074_p5, 1, 0 }
  0x18   : > { %s1426_s6 = scalar_select %p1079_p7, 1, 0 }
  0x19   : > { %p1085_p8 = por %p1074_p5, %p63_p4  ;;  %p1409_p9 = scmp.lt.s32.totalorder %s946_s25, 4 }
  0x1a   : > { %s1090_s8 = scalar_select %p48_p6, %s926_s20, %s50_s29  }
  0x1b   : > { %s1427_s7 = scalar_select %p1085_p8, 1, 0 }
  0x1c   : > { %1428 = sst [smem:[#allocation15_spill]] %s1090_s8  ;;  %s169_s9 = sand.u32 1, %s926_s20  }
  0x1d   : > { %s574_s10 = sshll.u32 %s169_s9, 4  ;;  %s575_s11 = sshll.u32 %s938_s23, 7 }
  0x1e   : > { %s1429_s0 = sld [smem:[#allocation18_spill]]  ;;  %s173_s26 = scalar_lea.vmem [#allocation3], %s574_s10 }
  0x1f   : > { %s182_s21 = sshll.u32 %s173_s26, 4  ;;  %p1106_p10 = pnand %p1409_p9, %p1065_p3  ;;  %s1100_s21 = int_to_ptr.vmem [resolvable:$true] %s182_s21 }
  0x20   : > { %s1110_s8 = scalar_lea.sflag [#allocation4], %s169_s9 }
  0x21   : > { %p738_p12 = pneg %p1106_p10 }
  0x24   : > { %s1098_s3 = scalar_lea.hbm %s1429_s0, %s575_s11  ;;  %s741_s30 = scalar_lea.hbm %s1429_s0, 512 }
  0x25   : > { %s736_s27 = scalar_lea.hbm %s1098_s3, 256  ;;  %p742_p3 = scmp.lt.u32.totalorder %s1098_s3, %s1429_s0 }
  0x26   : > { %p737_p11 = scmp.ne.s32.totalorder %s1098_s3, %s736_s27  ;;  %p743_p4 = scmp.lt.u32.totalorder %s741_s30, %s736_s27 }
  0x27   : > { %p745_p9 = scmp.lt.u32.totalorder %s736_s27, %s1098_s3 }
  0x28   : > { %p739_p13 = pnand %p738_p12, %p737_p11  ;;  %p744_p6 = por %p743_p4, %p742_p3 }
  0x2a   : > { %p740_p1 = pneg %p739_p13  ;;  %p746_p2 = por %p745_p9, %p744_p6 }
  0x2c   : > { %p747_p8 = pnand %p746_p2, %p740_p1 }
  0x2e   : > { %750 = shalt.err (!%p747_p8)
}
  0x2f   : > { %s751_s9 = scalar_lea.vmem %s1100_s21, 256  ;;  %s948_s10 = smov [#allocation3]  }
  0x30   : > { %p752_p11 = scmp.ne.s32.totalorder %s1100_s21, %s751_s9  ;;  %s756_s11 = sshll.u32 %s948_s10, 4  ;;  %s757_s11 = int_to_ptr.vmem [resolvable:$false] %s756_s11 }
  0x31   : > { %s758_s18 = scalar_lea.vmem %s757_s11, 512  ;;  %p759_p5 = scmp.lt.s32.totalorder %s1100_s21, %s757_s11 }
  0x32   : > { %p754_p13 = pnand %p752_p11, %p738_p12  ;;  %p760_p3 = scmp.lt.s32.totalorder %s758_s18, %s751_s9 }
  0x34   : > { %p755_p7 = pneg %p754_p13  ;;  %p761_p4 = por %p760_p3, %p759_p5 }
  0x36   : > { %p762_p9 = pnand %p761_p4, %p755_p7 }
  0x38   : > { %765 = shalt.err (!%p762_p9)
}
  0x39   : > { %s1413_s27 = smov 256   ;;  %s950_s30 = smov 128  }
  0x3a   : > { %s951_s26 = smov 8   ;;  %p581_p2 = scmp.ge.s32.totalorder %s946_s25, 1 }
  0x3b   : > { %604 = dma.hbm_to_vmem [thread:$0]  (!%p1106_p10), %s1098_s3, 256, %s1100_s21, %s1110_s8, %s1413_s27, %s950_s30, %s951_s26  }
  0x3c   : > { %p222_p5 = scmp.lt.s32.totalorder %s946_s25, 5  ;;  %s571_s10 = sadd.s32 4294967294, %s946_s25  }
  0x3d   : > { %s37_s11 = sadd.s32 1, %s942_s24  ;;  %s78_s18 = sadd.s32 1, %s914_s17 }
  0x3e   : > { %p1141_p7 = pnand %p581_p2, %p222_p5  ;;  %s1475_s11 = smov (!%p1051_p0, %s37_s11), %s942_s24 }
  0x3f   : > { %p85_p8 = scmp.ne.s32.totalorder %s914_s17, %s910_s16  ;;  %p91_p10 = scmp.ne.s32.totalorder %s910_s16, %s906_s15 }
  0x40   : > { %p39_p12 = scmp.ge.s32.totalorder %s1475_s11, 2  ;;  %s132_s3 = sadd.s32 1, %s902_s14 }
  0x41   : > { %p1432_p1 = scmp.eq.s32.totalorder %s946_s25, 0  ;;  %p1434_p11 = scmp.ne.s32.totalorder %s1425_s5, 0 }
  0x42   : > { %s1477_s11 = smov (%p39_p12, %s1475_s11), 0  ;;  %p142_p0 = scmp.ne.s32.totalorder %s902_s14, %s898_s13 }
  0x43   : > { %p1158_p6 = por %p85_p8, %p1432_p1  ;;  %p1164_p13 = por %p91_p10, %p1434_p11 }
  0x44   : > { %1436 = sst [smem:[#allocation16_spill]] %s1477_s11  ;;  %p148_p3 = scmp.ne.s32.totalorder %s898_s13, %s894_s12 }
  0x45   : > { %s1435_s8 = scalar_select %p1164_p13, 1, 0 }
  0x46   : > { %s74_s15 = ssub.s32 %s942_s24, %s1477_s11  ;;  %p149_p4 = scmp.eq.s32.totalorder %s571_s10, 3 }
  0x47   : > { %s75_s28 = sor.u32 %s74_s15, %s1072_s4  ;;  %p130_p9 = scmp.eq.s32.totalorder %s74_s15, 0 }
  0x48   : > { %p76_p2 = scmp.eq.s32.totalorder %s75_s28, 0  ;;  %p1437_p5 = scmp.ne.s32.totalorder %s1426_s6, 0 }
  0x49   : > { %s1184_s29 = scalar_select %p130_p9, %s902_s14, %s132_s3  }
  0x4a   : > { %p1179_p8 = por %p1437_p5, %p142_p0  ;;  %p1189_p10 = por %p149_p4, %p148_p3 }
  0x4b   : > { %s1187_s30 = scalar_select %p76_p2, %s914_s17, %s78_s18  }
  0x4c   : > { %s1438_s5 = scalar_select %p1179_p8, 1, 0 }
  0x4d   : > { %1439 = sst [smem:[#allocation17_spill]] %s1187_s30  ;;  %s192_s27 = sand.u32 1, %s914_s17  }
  0x4e   : > { %s1440_s26 = scalar_select %p1189_p10, 1, 0 }
  0x4f   : > { %s576_s10 = sshll.u32 %s192_s27, 8  ;;  %s578_s4 = sshll.u32 %s942_s24, 1 }
  0x50   : > { %s593_s0 = sshll.u32 %s938_s23, 6  ;;  %s196_s11 = scalar_lea.vmem [#allocation6], %s576_s10 }
  0x51   : > { %s206_s15 = sshll.u32 %s196_s11, 4  ;;  %s203_s28 = sadd.s32 %s593_s0, %s578_s4  ;;  %s1196_s15 = int_to_ptr.vmem [resolvable:$true] %s206_s15 }
  0x52   : > { %s580_s6 = sshll.u32 %s203_s28, 7  ;;  %p1441_p12 = scmp.lt.s32.totalorder %s946_s25, 4 }
  0x53   : > { %s1209_s30 = scalar_lea.hbm %s1404_s1, %s580_s6  ;;  %s1211_s0 = scalar_lea.sflag [#allocation7], %s192_s27 }
  0x54   : > { %p1202_p1 = pnand %p1441_p12, %p1158_p6  ;;  %s766_s11 = scalar_lea.hbm %s1209_s30, 4096 }
  0x55   : > { %p767_p11 = scmp.ne.s32.totalorder %s1209_s30, %s766_s11  ;;  %s771_s10 = scalar_lea.hbm %s1404_s1, 16384 }
  0x56   : > { %p768_p6 = pneg %p1202_p1  ;;  %p772_p4 = scmp.lt.u32.totalorder %s1209_s30, %s1404_s1 }
  0x57   : > { %p773_p9 = scmp.lt.u32.totalorder %s771_s10, %s766_s11  ;;  %p775_p5 = scmp.lt.u32.totalorder %s766_s11, %s1209_s30 }
  0x58   : > { %p769_p0 = pnand %p768_p6, %p767_p11 }
  0x59   : > { %p774_p2 = por %p773_p9, %p772_p4 }
  0x5a   : > { %p770_p3 = pneg %p769_p0 }
  0x5b   : > { %p776_p12 = por %p775_p5, %p774_p2 }
  0x5d   : > { %p777_p10 = pnand %p776_p12, %p770_p3 }
  0x5f   : > { %780 = shalt.err (!%p777_p10)
}
  0x60   : > { %s781_s27 = scalar_lea.vmem %s1196_s15, 4096  ;;  %s952_s6 = smov [#allocation6]  }
  0x61   : > { %p782_p11 = scmp.ne.s32.totalorder %s1196_s15, %s781_s27  ;;  %s786_s18 = sshll.u32 %s952_s6, 4  ;;  %s787_s18 = int_to_ptr.vmem [resolvable:$false] %s786_s18 }
  0x62   : > { %s788_s21 = scalar_lea.vmem %s787_s18, 8192  ;;  %p789_p13 = scmp.lt.s32.totalorder %s1196_s15, %s787_s18 }
  0x63   : > { %p784_p0 = pnand %p782_p11, %p768_p6  ;;  %p790_p4 = scmp.lt.s32.totalorder %s788_s21, %s781_s27 }
  0x65   : > { %p785_p8 = pneg %p784_p0  ;;  %p791_p9 = por %p790_p4, %p789_p13 }
  0x67   : > { %p792_p2 = pnand %p791_p9, %p785_p8 }
  0x69   : > { %795 = shalt.err (!%p792_p2)
}
  0x6a   : > { %s953_s11 = smov 512   ;;  %s954_s20 = smov 16  }
  0x6b   : > { %s1443_s10 = smov 256   ;;  %226 = sbr.rel (%p1141_p7) target bundleno = 428 (0x1ac), region = 32 }
  0x6c   : > { %607 = dma.hbm_to_vmem [thread:$0]  (!%p1202_p1), %s1209_s30, 4096, %s1196_s15, %s1211_s0, %s953_s11, %s1443_s10, %s954_s20  }
  0x6d   : > { %s228_s4 = sand.u32 (!%p1141_p7), 1, %s922_s19   ;;  %p1444_p13 = scmp.ne.s32.totalorder (!%p1141_p7), %s1427_s7, 0 }
  0x6e   : > { %s1243_s28 = sshll.u32 (!%p1141_p7), %s228_s4, 4  ;;  %s229_s27 = scalar_lea.sflag (!%p1141_p7), [#allocation4], %s228_s4 }
  0x6f   : > { %s232_s6 = scalar_lea.vmem (!%p1141_p7), [#allocation3], %s1243_s28 }
  0x72   : > { %881 = dma.done.wait (%p1444_p13), %s229_s27, 256  }
  0x73   : > { %883 = vsyncadd (%p1444_p13), %s229_s27, 4294967040  ;;  %s237_s3 = sand.u32 1, %s910_s16   ;;  %p1445_p7 = scmp.ne.s32.totalorder %s1435_s8, 0 }
  0x74   : > { %s583_s30 = sshll.u32 %s237_s3, 8  ;;  %s238_s15 = scalar_lea.sflag [#allocation7], %s237_s3 }
  0x75   : > { %s1251_s9 = scalar_lea.vmem [#allocation6], %s583_s30 }
  0x76   : > { %885 = dma.done.wait (%p1445_p7), %s238_s15, 4096  }
  0x77   : > { %887 = vsyncadd (%p1445_p7), %s238_s15, 4294963200  ;;  %s270_s0 = sand.u32 1, %s898_s13   ;;  %s585_s18 = sshll.u32 %s934_s22, 1 }
  0x78   : > { %s584_s7 = sshll.u32 %s270_s0, 5  ;;  %p277_p8 = scmp.lt.s32.totalorder %s585_s18, 3 }
  0x79   : > { %s1267_s10 = scalar_lea.vmem [#allocation8], %s584_s7  ;;  %s1446_s4 = sld [smem:[#allocation13_spill]] }
  0x7a   : > { %s1479_s18 = smov (!%p277_p8, %s585_s18), 3 }
  0x7b   : > { %s279_s20 = scalar_lea.vmem %s1405_s2, %s1479_s18 }
  0x7f   : > { %p586_p10 = scmp.ne.s32.totalorder %s1446_s4, 0 }
  0x80   : > { %v955_v0 = vmov (!%p586_p10), 0.0  }
  0x81   : > { %287 = sbr.rel (%p586_p10) target bundleno = 136 (0x88), region = 44  ;;  %288 = vst [vmem:[#allocation2] sm:$0xff] (!%p586_p10), %v955_v0  ;;  %289 = vst [vmem:[#allocation2 + $0x8] sm:$0xff] (!%p586_p10), %v955_v0 }
  0x82   : > { %290 = vst [vmem:[#allocation2 + $0x10] sm:$0xff] (!%p586_p10), %v955_v0  ;;  %291 = vst [vmem:[#allocation2 + $0x18] sm:$0xff] (!%p586_p10), %v955_v0 }
  0x88 PF: > { %v300_v1 = vld [vmem:[%s1251_s9 + $0x8] sm:$0xff]  ;;  %v302_v2 = vld [vmem:[%s1251_s9 + $0x18] sm:$0xff]  ;;  %v299_v3 = vld [vmem:[%s1251_s9] sm:$0xff]  ;;  %v956_v8 = vmov 0   ;;  %s1447_s8 = sld [smem:[#allocation13_spill]] }
  0x89   : > { %v332_v4 = vpack.c.bf16 %v302_v2, %v300_v1  ;;  %v301_v5 = vld [vmem:[%s1251_s9 + $0x10] sm:$0xff]  ;;  %v304_v6 = vld [vmem:[%s1251_s9 + $0x28] sm:$0xff]  ;;  %v306_v7 = vld [vmem:[%s1251_s9 + $0x38] sm:$0xff]  ;;  %379 = vmatprep.mubr.bf16.mxu0 %v956_v8 }
  0x8a   : > { %v331_v9 = vpack.c.bf16 %v301_v5, %v299_v3  ;;  %v334_v10 = vpack.c.bf16 %v306_v7, %v304_v6  ;;  %v303_v11 = vld [vmem:[%s1251_s9 + $0x20] sm:$0xff]  ;;  %v305_v12 = vld [vmem:[%s1251_s9 + $0x30] sm:$0xff]  ;;  %v308_v13 = vld [vmem:[%s1251_s9 + $0x48] sm:$0xff] }
  0x8b   : > { %347 = vmatprep.subr.bf16.mxu0 %v332_v4  ;;  %v310_v14 = vld [vmem:[%s1251_s9 + $0x58] sm:$0xff]  ;;  %v333_v15 = vpack.c.bf16 %v305_v12, %v303_v11  ;;  %v307_v17 = vld [vmem:[%s1251_s9 + $0x40] sm:$0xff]  ;;  %v309_v18 = vld [vmem:[%s1251_s9 + $0x50] sm:$0xff] }
  0x8c   : > { %348 = vmatpush1.bf16.msra.mxu0 %v331_v9  ;;  %v336_v16 = vpack.c.bf16 %v310_v14, %v308_v13  ;;  %v312_v19 = vld [vmem:[%s1251_s9 + $0x68] sm:$0xff]  ;;  %v314_v20 = vld [vmem:[%s1251_s9 + $0x78] sm:$0xff]  ;;  %v335_v21 = vpack.c.bf16 %v309_v18, %v307_v17  ;;  %v311_v23 = vld [vmem:[%s1251_s9 + $0x60] sm:$0xff] }
  0x8d   : > { %349 = vmatprep.subr.bf16.mxu0 %v334_v10  ;;  %v338_v22 = vpack.c.bf16 %v314_v20, %v312_v19  ;;  %v313_v24 = vld [vmem:[%s1251_s9 + $0x70] sm:$0xff]  ;;  %v316_v25 = vld [vmem:[%s1251_s9 + $0x88] sm:$0xff]  ;;  %v318_v26 = vld [vmem:[%s1251_s9 + $0x98] sm:$0xff] }
  0x8e   : > { %v337_v27 = vpack.c.bf16 %v313_v24, %v311_v23  ;;  %v340_v28 = vpack.c.bf16 %v318_v26, %v316_v25  ;;  %v315_v29 = vld [vmem:[%s1251_s9 + $0x80] sm:$0xff]  ;;  %v317_v30 = vld [vmem:[%s1251_s9 + $0x90] sm:$0xff]  ;;  %v320_v31 = vld [vmem:[%s1251_s9 + $0xa8] sm:$0xff]  ;;  %p587_p1 = scmp.ne.s32.totalorder %s1447_s8, 1 }
  0x8f   : > { %v322_v32 = vld [vmem:[%s1251_s9 + $0xb8] sm:$0xff]  ;;  %v339_v33 = vpack.c.bf16 %v317_v30, %v315_v29  ;;  %v319_v35 = vld [vmem:[%s1251_s9 + $0xa0] sm:$0xff]  ;;  %v321_v36 = vld [vmem:[%s1251_s9 + $0xb0] sm:$0xff]  ;;  %v408_v1 = vlaneseq (!%p587_p1) }
  0x90   : > { %350 = vmatpush1.bf16.msra.mxu0 %v333_v15  ;;  %v342_v34 = vpack.c.bf16 %v322_v32, %v320_v31  ;;  %v324_v37 = vld [vmem:[%s1251_s9 + $0xc8] sm:$0xff]  ;;  %v326_v38 = vld [vmem:[%s1251_s9 + $0xd8] sm:$0xff]  ;;  %v341_v39 = vpack.c.bf16 %v321_v36, %v319_v35  ;;  %v323_v41 = vld [vmem:[%s1251_s9 + $0xc0] sm:$0xff] }
  0x91   : > { %351 = vmatprep.subr.bf16.mxu0 %v336_v16  ;;  %v344_v40 = vpack.c.bf16 %v326_v38, %v324_v37  ;;  %v325_v42 = vld [vmem:[%s1251_s9 + $0xd0] sm:$0xff]  ;;  %v328_v43 = vld [vmem:[%s1251_s9 + $0xe8] sm:$0xff]  ;;  %v330_v44 = vld [vmem:[%s1251_s9 + $0xf8] sm:$0xff]  ;;  %v409_v2 = vshrl.u32 (!%p587_p1), %v408_v1, 7 }
  0x92   : > { %v343_v45 = vpack.c.bf16 %v325_v42, %v323_v41  ;;  %v346_v46 = vpack.c.bf16 %v330_v44, %v328_v43  ;;  %v327_v47 = vld [vmem:[%s1251_s9 + $0xe0] sm:$0xff]  ;;  %v329_v48 = vld [vmem:[%s1251_s9 + $0xf0] sm:$0xff]  ;;  %v297_v51 = vld [vmem:[%s232_s6 + $0x8] sm:$0xff] }
  0x93   : > { %v345_v49 = vpack.c.bf16 %v329_v48, %v327_v47  ;;  %v296_v50 = vld [vmem:[%s232_s6] sm:$0xff]  ;;  %v293_v54 = vld [vmem:[#allocation2 + $0x8] sm:$0xff]  ;;  %v295_v59 = vld [vmem:[#allocation2 + $0x18] sm:$0xff]  ;;  %v410_v5 = vsub.s32 (!%p587_p1), 0, %v409_v2  ;;  %v414_v6 = vsub.s32 (!%p587_p1), 1, %v409_v2 }
  0x94   : > { %352 = vmatpush1.bf16.msra.mxu0 %v335_v21  ;;  %v298_v52 = vpack.c.bf16 %v297_v51, %v296_v50  ;;  %v292_v53 = vld [vmem:[#allocation2] sm:$0xff]  ;;  %v294_v56 = vld [vmem:[#allocation2 + $0x10] sm:$0xff] }
  0x95   : > { %353 = vmatprep.subr.bf16.mxu0 %v338_v22  ;;  %v406_v3 = vld [vmem:[%s279_s20] sm:$0x3] (!%p587_p1) }
  0x96   : > { %v411_v10 = vrot.slane (!%p587_p1), %v406_v3, %v410_v5  ;;  %v415_v11 = vrot.slane (!%p587_p1), %v406_v3, %v414_v6 }
  0x98   : > { %354 = vmatpush1.bf16.msra.mxu0 %v337_v27 }
  0x99   : > { %355 = vmatprep.subr.bf16.mxu0 %v340_v28 }
  0x9c   : > { %356 = vmatpush1.bf16.msra.mxu0 %v339_v33 }
  0x9d   : > { %357 = vmatprep.subr.bf16.mxu0 %v342_v34 }
  0xa0   : > { %358 = vmatpush1.bf16.msra.mxu0 %v341_v39 }
  0xa1   : > { %359 = vmatprep.subr.bf16.mxu0 %v344_v40 }
  0xa4   : > { %360 = vmatpush1.bf16.msra.mxu0 %v343_v45 }
  0xa5   : > { %361 = vmatprep.subr.bf16.mxu0 %v346_v46 }
  0xa8   : > { %362 = vmatpush1.bf16.msra.mxu0 %v345_v49 }
  0xab   : > { %380 = vmatmul.mubr.bf16.vlgmr.msra.gmra.mrb[0].mxu0 %v298_v52 }
 0x17e   : > { %v381_v55 = vpop.f32.mrb[0].mxu0  ;;  %401 = sbr.rel (%p587_p1) target bundleno = 399 (0x18f), region = 48 }
 0x17f   : > { %v390_v57 = vadd.f32 %v381_v55, %v292_v53  ;;  %v383_v58 = vpop.f32.mrb[1].mxu0 }
 0x180   : > { %v391_v60 = vadd.f32 %v383_v58, %v293_v54  ;;  %v385_v61 = vpop.f32.mrb[2].mxu0 }
 0x181   : > { %394 = vst [vmem:[#allocation2] sm:$0xff] %v390_v57  ;;  %v392_v62 = vadd.f32 %v385_v61, %v294_v56  ;;  %v387_v63 = vpop.f32.mrb[3].mxu0 }
 0x182   : > { %395 = vst [vmem:[#allocation2 + $0x8] sm:$0xff] %v391_v60  ;;  %v393_v0 = vadd.f32 %v387_v63, %v295_v59 }
 0x183   : > { %396 = vst [vmem:[#allocation2 + $0x10] sm:$0xff] %v392_v62 }
 0x184   : > { %397 = vst [vmem:[#allocation2 + $0x18] sm:$0xff] %v393_v0 }
 0x188   : > { %v402_v4 = vld [vmem:[#allocation2] sm:$0xff] }
 0x189   : > { %v403_v7 = vld [vmem:[#allocation2 + $0x8] sm:$0xff]  ;;  %v418_v12 = vadd.f32 %v411_v10, %v402_v4 }
 0x18a   : > { %v404_v8 = vld [vmem:[#allocation2 + $0x10] sm:$0xff]  ;;  %v419_v13 = vadd.f32 %v415_v11, %v403_v7 }
 0x18b   : > { %v405_v9 = vld [vmem:[#allocation2 + $0x18] sm:$0xff]  ;;  %v420_v14 = vadd.f32 %v411_v10, %v404_v8  ;;  %422 = vst [vmem:[%s1267_s10] sm:$0xff] %v418_v12 }
 0x18c   : > { %v421_v15 = vadd.f32 %v415_v11, %v405_v9  ;;  %423 = vst [vmem:[%s1267_s10 + $0x8] sm:$0xff] %v419_v13 }
 0x18d   : > { %424 = vst [vmem:[%s1267_s10 + $0x10] sm:$0xff] %v420_v14 }
 0x18e   : > { %425 = vst [vmem:[%s1267_s10 + $0x18] sm:$0xff] %v421_v15 }
 0x18f PF: > { %s594_s6 = sshll.u32 %s934_s22, 8  ;;  %s1448_s15 = sld [smem:[#allocation19_spill]] }
 0x190   : > { %s443_s7 = sshll.u32 %s1267_s10, 4  ;;  %s1327_s21 = scalar_lea.sflag [#allocation5], %s270_s0  ;;  %s1323_s7 = int_to_ptr.vmem [resolvable:$true] %s443_s7 }
 0x191   : > { %s796_s11 = scalar_lea.vmem %s1323_s7, 512  ;;  %p1450_p3 = scmp.ne.s32.totalorder %s1438_s5, 0 }
 0x192   : > { %p797_p6 = scmp.ne.s32.totalorder %s1323_s7, %s796_s11  ;;  %s957_s22 = smov [#allocation8]  }
 0x193   : > { %s800_s20 = sshll.u32 %s957_s22, 4  ;;  %s801_s20 = int_to_ptr.vmem [resolvable:$false] %s800_s20 }
 0x194   : > { %p798_p5 = pnand %p797_p6, %p1450_p3  ;;  %s802_s4 = scalar_lea.vmem %s801_s20, 1024 }
 0x195   : > { %s1449_s9 = smov %s1448_s15  ;;  %s1320_s18 = scalar_lea.hbm %s1448_s15, %s594_s6 }
 0x196   : > { %p799_p12 = pneg %p798_p5  ;;  %p803_p11 = scmp.lt.s32.totalorder %s1323_s7, %s801_s20 }
 0x197   : > { %p804_p0 = scmp.lt.s32.totalorder %s802_s4, %s796_s11 }
 0x199   : > { %p805_p4 = por %p804_p0, %p803_p11 }
 0x19b   : > { %p806_p9 = pnand %p805_p4, %p799_p12 }
 0x19d   : > { %809 = shalt.err (!%p806_p9)
}
 0x19e   : > { %s810_s0 = scalar_lea.hbm %s1320_s18, 512  ;;  %s814_s28 = scalar_lea.hbm %s1449_s9, 1024 }
 0x19f   : > { %p811_p2 = scmp.ne.s32.totalorder %s1320_s18, %s810_s0  ;;  %p815_p8 = scmp.lt.u32.totalorder %s1320_s18, %s1449_s9 }
 0x1a0   : > { %p816_p10 = scmp.lt.u32.totalorder %s814_s28, %s810_s0  ;;  %p818_p6 = scmp.lt.u32.totalorder %s810_s0, %s1320_s18 }
 0x1a1   : > { %p812_p13 = pnand %p811_p2, %p1450_p3 }
 0x1a2   : > { %p817_p1 = por %p816_p10, %p815_p8 }
 0x1a3   : > { %p813_p7 = pneg %p812_p13 }
 0x1a4   : > { %p819_p5 = por %p818_p6, %p817_p1 }
 0x1a6   : > { %p820_p12 = pnand %p819_p5, %p813_p7 }
 0x1a8   : > { %823 = shalt.err (!%p820_p12)
}
 0x1a9   : > { %s958_s3 = smov 256   ;;  %s959_s30 = smov 512  }
 0x1aa   : > { %s960_s15 = smov 16  }
 0x1ab   : > { %599 = dma.vmem_to_hbm [thread:$0]  (%p1450_p3), %s1323_s7, 512, %s1320_s18, %s1327_s21, %s958_s3, %s959_s30, %s960_s15  }
 0x1ac PF: > { %p613_p11 = scmp.ge.s32.totalorder %s946_s25, 2  ;;  %s458_s11 = sand.u32 1, %s894_s12  }
 0x1ad   : > { %p1451_p0 = scmp.ne.s32.totalorder %s1440_s26, 0  ;;  %s459_s22 = scalar_lea.sflag [#allocation5], %s458_s11 }
 0x1af   : > { %p609_p4 = pnand %p613_p11, %p1451_p0 }
 0x1b1   : > { %889 = dma.done.wait (!%p609_p4), %s459_s22, 512  }
 0x1b2   : > { %891 = vsyncadd (!%p609_p4), %s459_s22, 4294966784  ;;  %s22_s25 = sadd.s32 1, %s946_s25   ;;  %s1453_s5 = sld [smem:[#allocation17_spill]] }
 0x1b3   : > { %p1356_p9 = scmp.ge.s32.totalorder %s22_s25, 6   ;;  %s1454_s7 = sld [smem:[#allocation12_spill]] }
 0x1b4   : > { %s1455_s21 = sld [smem:[#allocation15_spill]]  ;;  %s1456_s26 = sld [smem:[#allocation14_spill]] }
 0x1b5   : > { %s1457_s4 = sld [smem:[#allocation16_spill]]  ;;  %s1459_s12 = smov %s898_s13 }
 0x1b6   : > { %s1460_s13 = smov %s902_s14  ;;  %s1461_s14 = smov %s1184_s29 }
 0x1b7   : > { %s1462_s15 = smov %s910_s16  ;;  %s1463_s16 = smov %s914_s17 }
 0x1b8   : > { %s1464_s17 = smov %s1453_s5  ;;  %s1465_s18 = smov %s922_s19 }
 0x1b9   : > { %s1466_s19 = smov %s1454_s7  ;;  %s1469_s22 = smov %s942_s24 }
 0x1ba   : > { %s1467_s20 = smov %s1455_s21  ;;  %s1468_s21 = smov %s938_s23 }
 0x1bb   : > { %s1470_s23 = smov %s1456_s26  ;;  %s1471_s24 = smov %s1457_s4 }
 0x1bc   :  { %21 = sbr.rel (!%p1356_p9) target bundleno = 15 (0xf), region = 101 }
 0x1c3   :  { %464 = vsyncpa [#allocation4], 1 }
 0x1c4   :  { %466 = vsyncpa [#allocation4 + $0x1], 1 }
 0x1c5   :  { %467 = vsyncpa [#allocation7], 1 }
 0x1c6   :  { %469 = vsyncpa [#allocation7 + $0x1], 1 }
 0x1c7   :  { %470 = vsyncpa [#allocation5], 1 }
 0x1c8   :  { %472 = vsyncpa [#allocation5 + $0x1], 1 }

</bundles_post_ra>
